<compile_context>
chip_gen: v7x
topology: tpu7x:2x2x1
jax: 0.10.0
libtpu: 0.0.40
codegen_flags: <defaults>
</compile_context>

<pallas_src>
import jax
import jax.numpy as jnp
from jax.experimental import pallas as pl
from jax.experimental.pallas import tpu as pltpu

MARGIN = 1.0
EPS = 1e-6          # eps used by torch.nn.functional.pairwise_distance
AVERAGE = True      # module default


def _make_kernel(bp, tb, g, bpc, margin, eps, use_seg):
    """Tiled triplet-loss reduction kernel.

    bp:  packed-row count handled by the kernel (true extent, unpadded)
    tb:  packed rows per block
    g:   original rows folded per packed row (lane packing factor)
    bpc: blocks per core (extent of the reduction grid axis)
    """

    def kernel(*refs):
        if use_seg:
            seg_ref, a_ref, p_ref, n_ref, out_ref, acc_ref = refs
        else:
            a_ref, p_ref, n_ref, out_ref, acc_ref = refs

        c = pl.program_id(0)        # parallel (core-split) axis
        j = pl.program_id(1)        # reduction axis

        @pl.when(j == 0)
        def _():
            acc_ref[...] = jnp.zeros_like(acc_ref)

        # eps folded once: (a + eps) - p == a - p + eps (bit-level assoc. diff only).
        a = a_ref[...].astype(jnp.float32) + eps
        p = p_ref[...].astype(jnp.float32)
        n = n_ref[...].astype(jnp.float32)

        if use_seg:
            # seg[l, k] = 1 iff lane l belongs to packed sub-row k; a matmul
            # against it turns lane-packed squared diffs into per-row sums.
            seg = seg_ref[...]
            dp2 = jnp.dot((a - p) ** 2, seg, preferred_element_type=jnp.float32)
            dn2 = jnp.dot((a - n) ** 2, seg, preferred_element_type=jnp.float32)
        else:
            dp2 = jnp.sum((a - p) ** 2, axis=-1, keepdims=True)
            dn2 = jnp.sum((a - n) ** 2, axis=-1, keepdims=True)

        losses = jnp.maximum(jnp.sqrt(dp2) - jnp.sqrt(dn2) + margin, 0.0)  # [tb, g]

        blk = c * bpc + j           # unclamped block index

        # Interior blocks: every packed row is valid -> unmasked accumulate.
        @pl.when((blk + 1) * tb <= bp)
        def _():
            acc_ref[...] += losses

        # Tail block (bp % tb != 0) and per-core overhang blocks (clamped in the
        # index_map): mask packed rows past the true extent.
        @pl.when((blk + 1) * tb > bp)
        def _():
            r = jax.lax.broadcasted_iota(jnp.int32, losses.shape, 0)
            valid = (blk * tb + r) < bp
            acc_ref[...] += jnp.where(valid, losses, 0.0)

        # One cross-lane reduce + one lane-dense (8,128) output write per core.
        @pl.when(j == pl.num_programs(1) - 1)
        def _():
            out_ref[...] = jnp.full((8, 128), jnp.sum(acc_ref[...]),
                                    dtype=jnp.float32)

    return kernel


def triplet_loss(anchor, positive, negative, *, margin=MARGIN, average=AVERAGE):
    assert anchor.shape == positive.shape == negative.shape
    assert anchor.ndim == 2
    b, d = anchor.shape

    # ---- lane-dense packing for small embedding dims (no jnp.pad copy) -----
    g = 128 // d if (d < 128 and 128 % d == 0) else 1
    lane = g * d
    bp = b // g                    # packed rows processed by the kernel
    b_main = bp * g                # original rows processed by the kernel
    rem = b - b_main               # <= g-1 leftover rows -> plain-JAX epilogue

    total = jnp.float32(0.0)

    if bp > 0:
        def pack(x):
            if rem:
                x = x[:b_main]     # contiguous prefix slice; reshape is free
            return x.reshape(bp, lane)

        a2, p2, n2 = pack(anchor), pack(positive), pack(negative)

        # ---- per-generation tile sizing & VMEM limit ------------------------
        try:
            info = pltpu.get_tpu_info()
            vmem_cap = int(getattr(info, "vmem_capacity_bytes", 64 << 20))
        except Exception:
            vmem_cap = 64 << 20
        # 3/4 of physical per-core VMEM, capped at 64 MiB (v7x has only 64 MiB).
        vmem_limit = int(min(vmem_cap * 3 // 4, 64 << 20))

        itemsize = jnp.dtype(anchor.dtype).itemsize
        # 3 inputs x 2 pipeline buffers + lane-padded f32 vector accumulator.
        per_row = 3 * 2 * lane * itemsize + 128 * 4
        budget = min(vmem_limit - (4 << 20), 28 << 20)
        max_rows = max(8, budget // per_row)
        tb = int(min(bp, max_rows, 8192))
        if tb < bp:
            tb = max(8, (tb // 8) * 8)   # sublane-aligned unless block == full dim

        num_blocks = pl.cdiv(bp, tb)

        # Split the leading grid axis only on chips with 2 TensorCores.
        try:
            kind = jax.devices()[0].device_kind.lower()
        except Exception:
            kind = ""
        two_core = any(t in kind for t in ("7", "v4", "v5p"))
        nc = 2 if (two_core and num_blocks >= 2) else 1
        bpc = pl.cdiv(num_blocks, nc)

        def in_map(c, j):
            # Clamp so per-core overhang iterations still address a valid block;
            # their rows are zeroed by the kernel's tail branch.
            return (jnp.minimum(c * bpc + j, num_blocks - 1), 0)

        in_spec = pl.BlockSpec((tb, lane), in_map)
        use_seg = g > 1
        kernel = _make_kernel(bp, tb, g, bpc, margin, EPS, use_seg)

        in_specs = [in_spec, in_spec, in_spec]
        args = [a2, p2, n2]
        if use_seg:
            # Loop-invariant segment matrix: DMA'd once, VMEM-resident (same
            # block index every step), never rebuilt in-kernel.
            seg = (jnp.arange(lane, dtype=jnp.int32)[:, None] // d
                   == jnp.arange(g, dtype=jnp.int32)[None, :]).astype(jnp.float32)
            in_specs = [pl.BlockSpec((lane, g), lambda c, j: (0, 0))] + in_specs
            args = [seg] + args

        out = pl.pallas_call(
            kernel,
            out_shape=jax.ShapeDtypeStruct((nc * 8, 128), jnp.float32),
            grid_spec=pltpu.PrefetchScalarGridSpec(
                num_scalar_prefetch=0,
                grid=(nc, bpc),
                in_specs=in_specs,
                out_specs=pl.BlockSpec((8, 128), lambda c, j: (c, 0)),
                scratch_shapes=[pltpu.VMEM((tb, g), jnp.float32)],
            ),
            compiler_params=pltpu.CompilerParams(
                dimension_semantics=("parallel", "arbitrary"),
                vmem_limit_bytes=vmem_limit),
        )(*args)

        # Combine per-core partial sums.
        total = jnp.sum(out[0::8, 0])

    # Leftover rows (batch not a multiple of the lane-packing factor): handled
    # in plain JAX -- avoids a full-array padding copy of all three inputs.
    if rem:
        at = anchor[b_main:].astype(jnp.float32) + EPS
        pt = positive[b_main:].astype(jnp.float32)
        nt = negative[b_main:].astype(jnp.float32)
        dpt = jnp.sqrt(jnp.sum((at - pt) ** 2, axis=-1))
        dnt = jnp.sqrt(jnp.sum((at - nt) ** 2, axis=-1))
        total = total + jnp.sum(jnp.maximum(dpt - dnt + margin, 0.0))

    return total / b if average else total


def _reference(anchor, positive, negative, margin=MARGIN, average=AVERAGE):
    a = anchor.astype(jnp.float32)
    p = positive.astype(jnp.float32)
    n = negative.astype(jnp.float32)
    dp = jnp.sqrt(jnp.sum((a - p + EPS) ** 2, axis=-1))
    dn = jnp.sqrt(jnp.sum((a - n + EPS) ** 2, axis=-1))
    losses = jnp.maximum(dp - dn + margin, 0.0)
    return jnp.mean(losses) if average else jnp.sum(losses)


if __name__ == "__main__":
    key = jax.random.PRNGKey(0)
    k_a, k_p, k_n = jax.random.split(key, 3)

    # Primary case (small embedding batch, lane-packed path g = 4).
    B, D = 8, 32
    anchor = jax.random.normal(k_a, (B, D), dtype=jnp.float32)
    positive = jax.random.normal(k_p, (B, D), dtype=jnp.float32)
    negative = jax.random.normal(k_n, (B, D), dtype=jnp.float32)
    loss = jax.block_until_ready(triplet_loss(anchor, positive, negative))
    ref = _reference(anchor, positive, negative)
    assert jnp.allclose(loss, ref, rtol=1e-5, atol=1e-5), (loss, ref)

    # Ragged batch: 12 rows through the kernel, 1 leftover row via the epilogue.
    B2 = 13
    a2 = jax.random.normal(k_a, (B2, D), dtype=jnp.float32)
    p2 = jax.random.normal(k_p, (B2, D), dtype=jnp.float32)
    n2 = jax.random.normal(k_n, (B2, D), dtype=jnp.float32)
    loss2 = jax.block_until_ready(triplet_loss(a2, p2, n2))
    ref2 = _reference(a2, p2, n2)
    assert jnp.allclose(loss2, ref2, rtol=1e-5, atol=1e-5), (loss2, ref2)

    # g == 1 path (D == 128): direct row-sum, no segment matmul.
    B3, D3 = 16, 128
    a3 = jax.random.normal(k_a, (B3, D3), dtype=jnp.float32)
    p3 = jax.random.normal(k_p, (B3, D3), dtype=jnp.float32)
    n3 = jax.random.normal(k_n, (B3, D3), dtype=jnp.float32)
    loss3 = jax.block_until_ready(triplet_loss(a3, p3, n3))
    ref3 = _reference(a3, p3, n3)
    assert jnp.allclose(loss3, ref3, rtol=1e-5, atol=1e-5), (loss3, ref3)

    print("KERNEL_OK")
</pallas_src>

<mosaic_0001>
module attributes {stable_mosaic.version = 11 : i64} {
  func.func @kernel(%arg0: i32, %arg1: i32, %arg2: memref<128x4xf32, #tpu.memory_space<vmem>>, %arg3: memref<2x128xf32, #tpu.memory_space<vmem>>, %arg4: memref<2x128xf32, #tpu.memory_space<vmem>>, %arg5: memref<2x128xf32, #tpu.memory_space<vmem>>, %arg6: memref<8x128xf32, #tpu.memory_space<vmem>>, %arg7: memref<2x4xf32, #tpu.memory_space<vmem>>) attributes {dimension_semantics = [#tpu.dimension_semantics<parallel>, #tpu.dimension_semantics<arbitrary>], iteration_bounds = array<i64: 1, 1>, scalar_prefetch = 0 : i64, scratch_operands = 1 : i64, tpu.core_type = #tpu.core_type<tc>, window_params = [{pipeline_mode = #tpu.pipeline_mode<synchronous>, transform_indices = @transform_0, window_bounds = array<i64: 128, 4>}, {transform_indices = @transform_1, window_bounds = array<i64: 2, 128>}, {transform_indices = @transform_2, window_bounds = array<i64: 2, 128>}, {transform_indices = @transform_3, window_bounds = array<i64: 2, 128>}, {transform_indices = @transform_4, window_bounds = array<i64: 8, 128>}]} {
    %c0_i32 = arith.constant 0 : i32
    %0 = arith.cmpi eq, %arg1, %c0_i32 : i32
    %1 = arith.extui %0 : i1 to i32
    %c0_i32_0 = arith.constant 0 : i32
    %2 = arith.cmpi ne, %1, %c0_i32_0 : i32
    scf.if %2 {
      %cst_21 = arith.constant 0.000000e+00 : f32
      %37 = vector.broadcast %cst_21 : f32 to vector<2x4xf32>
      %c0_22 = arith.constant 0 : index
      %c0_23 = arith.constant 0 : index
      %38 = vector.load %arg7[%c0_22, %c0_23] : memref<2x4xf32, #tpu.memory_space<vmem>>, vector<2x4xf32>
      tpu.vector_store %arg7[%c0_22, %c0_23], %37 {strides = array<i32>} : memref<2x4xf32, #tpu.memory_space<vmem>>, vector<2x4xf32>,
    } else {
    }
    %c0 = arith.constant 0 : index
    %c0_1 = arith.constant 0 : index
    %3 = vector.load %arg3[%c0, %c0_1] : memref<2x128xf32, #tpu.memory_space<vmem>>, vector<2x128xf32>
    %cst = arith.constant 9.99999997E-7 : f32
    %4 = vector.broadcast %cst : f32 to vector<2x128xf32>
    %5 = arith.addf %3, %4 : vector<2x128xf32>
    %c0_2 = arith.constant 0 : index
    %c0_3 = arith.constant 0 : index
    %6 = vector.load %arg4[%c0_2, %c0_3] : memref<2x128xf32, #tpu.memory_space<vmem>>, vector<2x128xf32>
    %c0_4 = arith.constant 0 : index
    %c0_5 = arith.constant 0 : index
    %7 = vector.load %arg5[%c0_4, %c0_5] : memref<2x128xf32, #tpu.memory_space<vmem>>, vector<2x128xf32>
    %c0_6 = arith.constant 0 : index
    %c0_7 = arith.constant 0 : index
    %8 = vector.load %arg2[%c0_6, %c0_7] : memref<128x4xf32, #tpu.memory_space<vmem>>, vector<128x4xf32>
    %9 = arith.subf %5, %6 : vector<2x128xf32>
    %10 = arith.mulf %9, %9 : vector<2x128xf32>
    %cst_8 = arith.constant dense<0.000000e+00> : vector<2x4xf32>
    %11 = tpu.matmul %10, %8, %cst_8 {dimension_numbers = #tpu.dot_dimension_numbers<[1], [0], [0], [1], [0, 0, 1, 1], [], []>} : vector<2x128xf32>, vector<128x4xf32>, vector<2x4xf32> -> vector<2x4xf32>
    %12 = arith.subf %5, %7 : vector<2x128xf32>
    %13 = arith.mulf %12, %12 : vector<2x128xf32>
    %cst_9 = arith.constant dense<0.000000e+00> : vector<2x4xf32>
    %14 = tpu.matmul %13, %8, %cst_9 {dimension_numbers = #tpu.dot_dimension_numbers<[1], [0], [0], [1], [0, 0, 1, 1], [], []>} : vector<2x128xf32>, vector<128x4xf32>, vector<2x4xf32> -> vector<2x4xf32>
    %15 = math.sqrt %11 : vector<2x4xf32>
    %16 = math.sqrt %14 : vector<2x4xf32>
    %17 = arith.subf %15, %16 : vector<2x4xf32>
    %cst_10 = arith.constant 1.000000e+00 : f32
    %18 = vector.broadcast %cst_10 : f32 to vector<2x4xf32>
    %19 = arith.addf %17, %18 : vector<2x4xf32>
    %cst_11 = arith.constant 0.000000e+00 : f32
    %20 = vector.broadcast %cst_11 : f32 to vector<2x4xf32>
    %21 = arith.maximumf %19, %20 : vector<2x4xf32>
    %c1_i32 = arith.constant 1 : i32
    %22 = arith.muli %arg0, %c1_i32 : i32
    %23 = arith.addi %22, %arg1 : i32
    %c1_i32_12 = arith.constant 1 : i32
    %24 = arith.addi %23, %c1_i32_12 : i32
    %c2_i32 = arith.constant 2 : i32
    %25 = arith.muli %24, %c2_i32 : i32
    %c2_i32_13 = arith.constant 2 : i32
    %26 = arith.cmpi sle, %25, %c2_i32_13 : i32
    %27 = arith.extui %26 : i1 to i32
    %c0_i32_14 = arith.constant 0 : i32
    %28 = arith.cmpi ne, %27, %c0_i32_14 : i32
    scf.if %28 {
      %c0_21 = arith.constant 0 : index
      %c0_22 = arith.constant 0 : index
      %37 = vector.load %arg7[%c0_21, %c0_22] : memref<2x4xf32, #tpu.memory_space<vmem>>, vector<2x4xf32>
      %38 = arith.addf %37, %21 : vector<2x4xf32>
      %c0_23 = arith.constant 0 : index
      %c0_24 = arith.constant 0 : index
      %39 = vector.load %arg7[%c0_23, %c0_24] : memref<2x4xf32, #tpu.memory_space<vmem>>, vector<2x4xf32>
      tpu.vector_store %arg7[%c0_23, %c0_24], %38 {strides = array<i32>} : memref<2x4xf32, #tpu.memory_space<vmem>>, vector<2x4xf32>,
    } else {
    }
    %c1_i32_15 = arith.constant 1 : i32
    %29 = arith.addi %23, %c1_i32_15 : i32
    %c2_i32_16 = arith.constant 2 : i32
    %30 = arith.muli %29, %c2_i32_16 : i32
    %c2_i32_17 = arith.constant 2 : i32
    %31 = arith.cmpi sgt, %30, %c2_i32_17 : i32
    %32 = arith.extui %31 : i1 to i32
    %c0_i32_18 = arith.constant 0 : i32
    %33 = arith.cmpi ne, %32, %c0_i32_18 : i32
    scf.if %33 {
      %37 = tpu.iota {dimensions = array<i32: 0>} : vector<2x4xi32>
      %c2_i32_21 = arith.constant 2 : i32
      %38 = arith.muli %23, %c2_i32_21 : i32
      %39 = vector.broadcast %38 : i32 to vector<2x4xi32>
      %40 = arith.addi %39, %37 : vector<2x4xi32>
      %c2_i32_22 = arith.constant 2 : i32
      %41 = vector.broadcast %c2_i32_22 : i32 to vector<2x4xi32>
      %42 = arith.cmpi slt, %40, %41 : vector<2x4xi32>
      %c0_23 = arith.constant 0 : index
      %c0_24 = arith.constant 0 : index
      %43 = vector.load %arg7[%c0_23, %c0_24] : memref<2x4xf32, #tpu.memory_space<vmem>>, vector<2x4xf32>
      %cst_25 = arith.constant 0.000000e+00 : f32
      %44 = vector.broadcast %cst_25 : f32 to vector<2x4xf32>
      %45 = arith.select %42, %21, %44 : vector<2x4xi1>, vector<2x4xf32>
      %46 = arith.addf %43, %45 : vector<2x4xf32>
      %c0_26 = arith.constant 0 : index
      %c0_27 = arith.constant 0 : index
      %47 = vector.load %arg7[%c0_26, %c0_27] : memref<2x4xf32, #tpu.memory_space<vmem>>, vector<2x4xf32>
      tpu.vector_store %arg7[%c0_26, %c0_27], %46 {strides = array<i32>} : memref<2x4xf32, #tpu.memory_space<vmem>>, vector<2x4xf32>,
    } else {
    }
    %c0_i32_19 = arith.constant 0 : i32
    %34 = arith.cmpi eq, %arg1, %c0_i32_19 : i32
    %35 = arith.extui %34 : i1 to i32
    %c0_i32_20 = arith.constant 0 : i32
    %36 = arith.cmpi ne, %35, %c0_i32_20 : i32
    scf.if %36 {
      %c0_21 = arith.constant 0 : index
      %c0_22 = arith.constant 0 : index
      %37 = vector.load %arg7[%c0_21, %c0_22] : memref<2x4xf32, #tpu.memory_space<vmem>>, vector<2x4xf32>
      %38 = vector.shape_cast %37 : vector<2x4xf32> to vector<1x2x4xf32>
      %cst_23 = arith.constant dense<0.000000e+00> : vector<1xf32>
      %39 = vector.multi_reduction <add>, %38, %cst_23 [1, 2] : vector<1x2x4xf32> to vector<1xf32>
      %40 = vector.shape_cast %39 : vector<1xf32> to vector<1x1x1xf32>
      %41 = vector.extract %40[0, 0, 0] : f32 from vector<1x1x1xf32>
      %42 = vector.broadcast %41 : f32 to vector<8x128xf32>
      %c0_24 = arith.constant 0 : index
      %c0_25 = arith.constant 0 : index
      %43 = vector.load %arg6[%c0_24, %c0_25] : memref<8x128xf32, #tpu.memory_space<vmem>>, vector<8x128xf32>
      tpu.vector_store %arg6[%c0_24, %c0_25], %42 {strides = array<i32>} : memref<8x128xf32, #tpu.memory_space<vmem>>, vector<8x128xf32>,
    } else {
    }
    return
  }
  func.func @transform_0(%arg0: i32, %arg1: i32) -> (i32, i32) {
    %c0_i32 = arith.constant 0 : i32
    %c0_i32_0 = arith.constant 0 : i32
    %c0_i32_1 = arith.constant 0 : i32
    return %c0_i32, %c0_i32_0 : i32, i32
  }
  func.func @transform_1(%arg0: i32, %arg1: i32) -> (i32, i32) {
    %c1_i32 = arith.constant 1 : i32
    %0 = arith.muli %arg0, %c1_i32 : i32
    %1 = arith.addi %0, %arg1 : i32
    %c0_i32 = arith.constant 0 : i32
    %2 = arith.minsi %1, %c0_i32 : i32
    %c0_i32_0 = arith.constant 0 : i32
    %c0_i32_1 = arith.constant 0 : i32
    return %2, %c0_i32_0 : i32, i32
  }
  func.func @transform_2(%arg0: i32, %arg1: i32) -> (i32, i32) {
    %c1_i32 = arith.constant 1 : i32
    %0 = arith.muli %arg0, %c1_i32 : i32
    %1 = arith.addi %0, %arg1 : i32
    %c0_i32 = arith.constant 0 : i32
    %2 = arith.minsi %1, %c0_i32 : i32
    %c0_i32_0 = arith.constant 0 : i32
    %c0_i32_1 = arith.constant 0 : i32
    return %2, %c0_i32_0 : i32, i32
  }
  func.func @transform_3(%arg0: i32, %arg1: i32) -> (i32, i32) {
    %c1_i32 = arith.constant 1 : i32
    %0 = arith.muli %arg0, %c1_i32 : i32
    %1 = arith.addi %0, %arg1 : i32
    %c0_i32 = arith.constant 0 : i32
    %2 = arith.minsi %1, %c0_i32 : i32
    %c0_i32_0 = arith.constant 0 : i32
    %c0_i32_1 = arith.constant 0 : i32
    return %2, %c0_i32_0 : i32, i32
  }
  func.func @transform_4(%arg0: i32, %arg1: i32) -> (i32, i32) {
    %c0_i32 = arith.constant 0 : i32
    %c0_i32_0 = arith.constant 0 : i32
    return %arg0, %c0_i32 : i32, i32
  }
}

</mosaic_0001>

<bundles_post_ra>
// kernel: tpu_custom_call.1
= control target key start
LH: loop header
LB: loop body
LE: loop exit
PB: predicated region body
PF: predicated region fallthrough
CT: control target
= control target key end

     0   :  { %v547_v3 = vmov 0.0|0.0   ;;  %vm548_vm0 = vmmov 0   ;;  %v549_v6 = vmov 0.0   ;;  %s651_s0 = inlined_call_operand.vmem [shape: f32[128,4], index: 0, kind: input, shape index: {}]   ;;  %s652_s1 = inlined_call_operand.vmem [shape: f32[2,128], index: 1, kind: input, shape index: {}]   ;;  %s653_s2 = inlined_call_operand.vmem [shape: f32[2,128], index: 2, kind: input, shape index: {}]   ;;  %s654_s3 = inlined_call_operand.vmem [shape: f32[2,128], index: 3, kind: input, shape index: {}]   ;;  %s655_s4 = inlined_call_operand.hbm [shape: f32[8,128], index: 4, kind: output, shape index: {}]  }
   0x1   :  { %v109_v0 = vld [vmem:[%s651_s0] sm:$0xff]  ;;  %v110_v1 = vld [vmem:[%s651_s0 + $0x8] sm:$0xff]  ;;  %v111_v2 = vld [vmem:[%s651_s0 + $0x10] sm:$0xff]  ;;  %465 = vmatprep.subr.bf16.mxu0 %v547_v3  ;;  %489 = vmatprep.subr.bf16.mxu1 %v547_v3 }
   0x2   :  { %v466_v4 = vpack.c.bf16 %v110_v1, %v109_v0  ;;  %v112_v5 = vld [vmem:[%s651_s0 + $0x18] sm:$0xff]  ;;  %427 = vmatprep.mubr.msk.f32.mxu0 %vm548_vm0, %v549_v6  ;;  %462 = vmatprep.mubr.msk.f32.mxu1 %vm548_vm0, %v549_v6  ;;  %v113_v8 = vld [vmem:[%s651_s0 + $0x20] sm:$0xff]  ;;  %v114_v9 = vld [vmem:[%s651_s0 + $0x28] sm:$0xff] }
   0x3   :  { %v469_v7 = vpack.c.bf16 %v112_v5, %v111_v2 }
   0x4   :  { %467 = vmatpush3.bf16.msra.mxu0 %v466_v4  ;;  %491 = vmatpush3.bf16.msra.mxu1 %v466_v4 }
   0x5   :  { %468 = vmatprep.subr.bf16.mxu0 %v547_v3  ;;  %492 = vmatprep.subr.bf16.mxu1 %v547_v3 }
   0x6   :  { %9 = vsyncpa [#allocation4], 0  ;;  %v472_v10 = vpack.c.bf16 %v114_v9, %v113_v8  ;;  %v115_v11 = vld [vmem:[%s651_s0 + $0x30] sm:$0xff]  ;;  %v116_v12 = vld [vmem:[%s651_s0 + $0x38] sm:$0xff]  ;;  %vm103_vm1 = vcmask 25600  }
   0x7   :  { %v475_v13 = vpack.c.bf16 %v116_v12, %v115_v11  ;;  %v117_v14 = vld [vmem:[%s651_s0 + $0x40] sm:$0xff]  ;;  %v118_v15 = vld [vmem:[%s651_s0 + $0x48] sm:$0xff]  ;;  %v119_v17 = vld [vmem:[%s651_s0 + $0x50] sm:$0xff]  ;;  %104 = vst.msk [vmem:[#allocation2] sm:$0x3] %vm103_vm1, %v549_v6 }
   0x8   :  { %470 = vmatpush3.bf16.msra.mxu0 %v469_v7  ;;  %494 = vmatpush3.bf16.msra.mxu1 %v469_v7  ;;  %v478_v16 = vpack.c.bf16 %v118_v15, %v117_v14  ;;  %v120_v18 = vld [vmem:[%s651_s0 + $0x58] sm:$0xff]  ;;  %v105_v20 = vld [vmem:[%s652_s1] sm:$0x3]  ;;  %v122_v22 = vld [vmem:[%s651_s0 + $0x68] sm:$0xff] }
   0x9   :  { %471 = vmatprep.subr.bf16.mxu0 %v547_v3  ;;  %495 = vmatprep.subr.bf16.mxu1 %v547_v3  ;;  %v481_v19 = vpack.c.bf16 %v120_v18, %v119_v17  ;;  %v121_v21 = vld [vmem:[%s651_s0 + $0x60] sm:$0xff]  ;;  %v106_v23 = vadd.f32 1e-06, %v105_v20  ;;  %v123_v27 = vld [vmem:[%s651_s0 + $0x70] sm:$0xff]  ;;  %v124_v28 = vld [vmem:[%s651_s0 + $0x78] sm:$0xff]  ;;  %s550_s0 = smov [#allocation3]  }
   0xa   :  { %v484_v24 = vpack.c.bf16 %v122_v22, %v121_v21  ;;  %v107_v25 = vld [vmem:[%s653_s2] sm:$0x3]  ;;  %v487_v31 = vpack.c.bf16 %v124_v28, %v123_v27  ;;  %s335_s2 = sshll.u32 %s550_s0, 4  ;;  %s336_s2 = int_to_ptr.vmem [resolvable:$true] %s335_s2 }
   0xb   :  { %v108_v26 = vld [vmem:[%s654_s3] sm:$0x3]  ;;  %v125_v29 = vsub.f32 %v106_v23, %v107_v25  ;;  %s523_s26 = scalar_lea.vmem %s336_s2, 128  ;;  %p528_p1 = scmp.lt.s32.totalorder %s336_s2, %s336_s2 }
   0xc   :  { %473 = vmatpush3.bf16.msra.mxu0 %v472_v10  ;;  %497 = vmatpush3.bf16.msra.mxu1 %v472_v10  ;;  %v197_v30 = vsub.f32 %v106_v23, %v108_v26  ;;  %p524_p0 = scmp.ne.s32.totalorder %s336_s2, %s523_s26  ;;  %p529_p2 = scmp.lt.s32.totalorder %s523_s26, %s523_s26 }
   0xd   :  { %474 = vmatprep.subr.bf16.mxu0 %v547_v3  ;;  %498 = vmatprep.subr.bf16.mxu1 %v547_v3  ;;  %v126_v32 = vmul.f32 %v125_v29, %v125_v29 }
   0xe   :  { %v198_v33 = vmul.f32 %v197_v30, %v197_v30  ;;  %v293_v50 = vld [vmem:[#allocation2] sm:$0x3]  ;;  %p530_p3 = por %p529_p2, %p528_p1 }
  0x10   :  { %476 = vmatpush3.bf16.msra.mxu0 %v475_v13  ;;  %500 = vmatpush3.bf16.msra.mxu1 %v475_v13  ;;  %p531_p4 = pnand %p530_p3, %p524_p0 }
  0x11   :  { %477 = vmatprep.subr.bf16.mxu0 %v547_v3  ;;  %501 = vmatprep.subr.bf16.mxu1 %v547_v3 }
  0x14   :  { %479 = vmatpush3.bf16.msra.mxu0 %v478_v16  ;;  %503 = vmatpush3.bf16.msra.mxu1 %v478_v16 }
  0x15   :  { %480 = vmatprep.subr.bf16.mxu0 %v547_v3  ;;  %504 = vmatprep.subr.bf16.mxu1 %v547_v3 }
  0x18   :  { %482 = vmatpush3.bf16.msra.mxu0 %v481_v19  ;;  %506 = vmatpush3.bf16.msra.mxu1 %v481_v19 }
  0x19   :  { %483 = vmatprep.subr.bf16.mxu0 %v547_v3  ;;  %507 = vmatprep.subr.bf16.mxu1 %v547_v3 }
  0x1c   :  { %485 = vmatpush3.bf16.msra.mxu0 %v484_v24  ;;  %509 = vmatpush3.bf16.msra.mxu1 %v484_v24 }
  0x1d   :  { %486 = vmatprep.subr.bf16.mxu0 %v547_v3  ;;  %510 = vmatprep.subr.bf16.mxu1 %v547_v3 }
  0x20   :  { %488 = vmatpush3.bf16.msra.mxu0 %v487_v31  ;;  %512 = vmatpush3.bf16.msra.mxu1 %v487_v31 }
  0x23   :  { %428 = vmatmul.mubr.f32.vlgmr.msra.gmra.mrb[0].mxu0 %v126_v32  ;;  %463 = vmatmul.mubr.f32.vlgmr.msra.gmra.mrb[0].mxu1 %v198_v33 }
  0xf6   :  { %v193_v34 = vpop.f32.mrb[0].mxu0  ;;  %v265_v35 = vpop.f32.mrb[0].mxu1 }
  0xf7   :  { %519 = vrsqrt.f32 %v193_v34  ;;  %v429_v36 = vpop.f32.mrb[1].mxu0  ;;  %v464_v37 = vpop.f32.mrb[1].mxu1  ;;  %vm271_vm2 = vcmp.eq.f32.partialorder %v193_v34, inf  ;;  %v274_v41 = vand.u32 2147483648, %v193_v34  ;;  %vm273_vm3 = vcmp.eq.f32.partialorder %v193_v34, 0.0 }
  0xf8   :  { %521 = vrsqrt.f32 %v265_v35  ;;  %vm278_vm4 = vcmp.eq.f32.partialorder %v265_v35, inf  ;;  %v281_v44 = vand.u32 2147483648, %v265_v35  ;;  %vm280_vm5 = vcmp.eq.f32.partialorder %v265_v35, 0.0 }
 0x101   :  { %v520_v38 = vpop.eup %519 }
 0x102   :  { %v522_v39 = vpop.eup %521  ;;  %v270_v40 = vmul.f32 %v520_v38, %v193_v34 }
 0x103   :  { %v277_v42 = vmul.f32 %v522_v39, %v265_v35 }
 0x104   :  { %v272_v43 = vsel %vm271_vm2, %v193_v34, %v270_v40 }
 0x105   :  { %v275_v45 = vsel %vm273_vm3, %v274_v41, %v272_v43  ;;  %v279_v46 = vsel %vm278_vm4, %v265_v35, %v277_v42 }
 0x106   :  { %v282_v47 = vsel %vm280_vm5, %v281_v44, %v279_v46 }
 0x107   :  { %v283_v48 = vsub.f32 %v275_v45, %v282_v47 }
 0x109   :  { %v284_v49 = vadd.f32 1.0, %v283_v48 }
 0x10b   :  { %v285_v51 = vmax.f32 %v284_v49, 0.0 }
 0x10d   :  { %v294_v52 = vadd.f32 %v293_v50, %v285_v51 }
 0x10f   :  { %296 = vst.msk [vmem:[#allocation2] sm:$0x3] %vm103_vm1, %v294_v52 }
 0x116   :  { %v315_v53 = vld [vmem:[#allocation2] sm:$0x3] }
 0x117   :  { %v317_v54 = vsel %vm103_vm1, %v315_v53, 0.0 }
 0x118   :  { %318 = vadd.xlane.f32.xlu0 %v317_v54 }
 0x1a5   :  { %v319_v55 = vpop.xlane.xlu0 %318 }
 0x1a6   :  { %v320_v56 = vrot.slane %v319_v55, 4 }
 0x1a8   :  { %v321_v57 = vadd.f32 %v320_v56, %v319_v55 }
 0x1aa   :  { %v322_v58 = vrot.slane %v321_v57, 2 }
 0x1ac   :  { %v323_v59 = vadd.f32 %v322_v58, %v321_v57 }
 0x1ae   :  { %v324_v60 = vrot.slane %v323_v59, 1 }
 0x1b0   :  { %v325_v61 = vadd.f32 %v324_v60, %v323_v59 }
 0x1b2   :  { %513 = vpush %v325_v61 }
 0x1e3   :  { %s514_s3 = spop %513 }
 0x1e4   :  { %v327_v62 = vstv %s514_s3 }
 0x1e5   :  { %328 = vst [vmem:[#allocation3] sm:$0xff] %v327_v62 }
 0x1e6   :  { %534 = shalt.err (!%p531_p4)
}
 0x1e7   :  { %s535_s29 = scalar_lea.hbm %s655_s4, 128 }
 0x1e8   :  { %p536_p5 = scmp.ne.s32.totalorder %s655_s4, %s535_s29  ;;  %p539_p6 = scmp.lt.u32.totalorder %s535_s29, %s655_s4 }
 0x1ea   :  { %p541_p7 = pnand %p539_p6, %p536_p5 }
 0x1ec   :  { %544 = shalt.err (!%p541_p7)
}
 0x1ed   :  { %338 = dma.vmem_to_hbm [thread:$0]  %s336_s2, 128, %s655_s4, [#allocation4]  }
 0x1ee   :  { %545 = dma.done.wait [#allocation4], 128  }
 0x1ef   :  { %546 = vsyncadd [#allocation4], 4294967168 }
 0x1f0   :  { %342 = vsyncpa [#allocation4], 1 }

</bundles_post_ra>
